<compile_context>
chip_gen: v5e
topology: v5e:2x2
jax: 0.10.0
libtpu: 0.0.40
codegen_flags: <defaults>
</compile_context>

<pallas_src>
import functools

import jax
import jax.numpy as jnp
from jax.experimental import pallas as pl
from jax.experimental.pallas import tpu as pltpu


def _cdiv(a, b):
    return -(-a // b)


def _sublane_multiple(itemsize):
    # Native sublane packing: f32 -> 8, bf16 -> 16, int8/fp8 -> 32.
    return {4: 8, 2: 16, 1: 32}.get(itemsize, 8)


def _gap_kernel(x_ref, o_ref, acc_ref, *, inv_hw, hw, ts, mask_tail):
    """x_ref: (TR, TS) tile of the flattened (N*C, H*W) input.
    o_ref / acc_ref: (TR, 1) output block / f32 partial-sum scratch."""
    k = pl.program_id(1)

    @pl.when(k == 0)
    def _init():
        acc_ref[...] = jnp.zeros_like(acc_ref)

    # Hot loop: widen to f32 (no-op for f32 input) and accumulate.  For a ragged
    # spatial tail, zero the out-of-range columns so the sum stays exact; the
    # divisor below is the *true* H*W.
    x = x_ref[...].astype(jnp.float32)
    if mask_tail:
        col = jax.lax.broadcasted_iota(jnp.int32, x.shape, dimension=1)
        x = jnp.where(col < hw - k * ts, x, 0.0)
    acc_ref[...] += jnp.sum(x, axis=-1, keepdims=True)

    @pl.when(k == pl.num_programs(1) - 1)
    def _finalize():
        o_ref[...] = (acc_ref[...] * inv_hw).astype(o_ref.dtype)


def _pick_row_tile(R, sub, max_rows):
    """Row-block size: a multiple of `sub` (or == R); >= 2 row blocks when R allows
    so the 'parallel' grid axis can feed both v7x TensorCores."""
    if R <= sub:
        return R  # single full-extent block (legal: block dim == array dim)
    n_units = _cdiv(R, sub)
    tr_units = max(1, min(max_rows // sub, n_units))
    if tr_units >= n_units and n_units >= 2:
        tr_units = _cdiv(n_units, 2)  # split so the parallel axis has >= 2 blocks
    return tr_units * sub


def _pick_tiles(R, HW, itemsize, target_block_bytes):
    """Choose (TR, TS, n_row_blocks, n_spatial_steps, mask_tail)."""
    sub = _sublane_multiple(itemsize)
    row_bytes = HW * itemsize

    if sub * row_bytes <= target_block_bytes:
        # Whole spatial extent per block: one reduction step, one fully contiguous
        # DMA per block; batch as many rows as the byte budget allows.
        TS = HW
        TR = _pick_row_tile(R, sub, max(sub, target_block_bytes // max(row_bytes, 1)))
    else:
        # Tile the spatial (reduction) axis.  TS is a multiple of 128 and >= 512 so
        # each per-row strided burst is >= ~1-2 KiB (DMA efficiency, esp. bf16).
        TR = _pick_row_tile(R, sub, sub)
        ts_budget = target_block_bytes // max(TR * itemsize, 1)
        TS = max(512, (ts_budget // 128) * 128)
        TS = min(TS, _cdiv(HW, 128) * 128)
        if TS >= HW:  # budget covers everything anyway -> full-extent tile
            TS = HW

    n_rows = _cdiv(R, TR)
    n_k = _cdiv(HW, TS)
    mask_tail = (HW % TS) != 0
    return TR, TS, n_rows, n_k, mask_tail


def global_avg_pool2d(x, *, target_block_bytes=4 * 1024 * 1024):
    """x: (N, C, H, W) -> (N, C, 1, 1); mean over H, W.
    Equivalent to F.avg_pool2d(x, kernel_size=x.size()[2:])."""
    N, C, H, W = x.shape
    HW = H * W
    R = N * C
    itemsize = jnp.dtype(x.dtype).itemsize

    TR, TS, n_rows, n_k, mask_tail = _pick_tiles(R, HW, itemsize, target_block_bytes)

    x_flat = x.reshape(R, HW)  # contiguous reshape: free, no extra HBM traffic

    # 3-deep input pipelining keeps the DMA engine back-to-back (compute per step
    # is trivial).  Only when it fits comfortably in every generation's default
    # scoped VMEM (<= ~14 MiB of input buffers) and there are enough steps.
    block_bytes = TR * TS * itemsize
    in_spec_kwargs = {}
    if (n_rows * n_k >= 3 and 3 * block_bytes <= 14 * 1024 * 1024
            and hasattr(pl, "Buffered")):
        in_spec_kwargs["pipeline_mode"] = pl.Buffered(3)
    in_spec = pl.BlockSpec((TR, TS), lambda r, k: (r, k), **in_spec_kwargs)

    out = pl.pallas_call(
        functools.partial(
            _gap_kernel,
            inv_hw=1.0 / float(HW), hw=HW, ts=TS, mask_tail=mask_tail,
        ),
        out_shape=jax.ShapeDtypeStruct((R, 1), x.dtype),
        grid_spec=pltpu.PrefetchScalarGridSpec(
            num_scalar_prefetch=0,
            grid=(n_rows, n_k),
            in_specs=[in_spec],
            # Output block index ignores k -> stays resident across the reduction
            # axis and is written back once, after the final spatial tile.
            out_specs=pl.BlockSpec((TR, 1), lambda r, k: (r, 0)),
            scratch_shapes=[pltpu.VMEM((TR, 1), jnp.float32)],
        ),
        compiler_params=pltpu.CompilerParams(
            # Row axis shardable across TensorCores (v7x megacore); spatial axis is
            # the accumulating reduction axis.
            dimension_semantics=("parallel", "arbitrary"),
        ),
    )(x_flat)

    return out.reshape(N, C, 1, 1)


if __name__ == "__main__":
    key = jax.random.PRNGKey(0)
    N, C, H, W = 2, 4, 16, 16
    x = jax.random.normal(key, (N, C, H, W), dtype=jnp.float32)

    y = global_avg_pool2d(x)
    jax.block_until_ready(y)

    ref = jnp.mean(x, axis=(2, 3), keepdims=True)
    assert y.shape == (N, C, 1, 1), y.shape
    assert jnp.allclose(y, ref, atol=1e-5, rtol=1e-5)

    # Exercise the spatially-tiled path: ragged H*W tail (in-kernel mask, no pad),
    # ragged row block (N*C = 10, not a multiple of 8), multi-step reduction and
    # triple-buffered input, by shrinking the block-byte budget.
    N2, C2, H2, W2 = 2, 5, 37, 41
    x2 = jax.random.normal(jax.random.PRNGKey(1), (N2, C2, H2, W2), jnp.float32)
    y2 = global_avg_pool2d(x2, target_block_bytes=8 * 512 * 4)
    jax.block_until_ready(y2)
    ref2 = jnp.mean(x2, axis=(2, 3), keepdims=True)
    assert y2.shape == (N2, C2, 1, 1), y2.shape
    assert jnp.allclose(y2, ref2, atol=1e-5, rtol=1e-5)

    print("KERNEL_OK")
</pallas_src>

<mosaic_0001>
module attributes {stable_mosaic.version = 11 : i64} {
  func.func @_gap_kernel(%arg0: i32, %arg1: i32, %arg2: memref<8x256xf32, #tpu.memory_space<vmem>>, %arg3: memref<8x1xf32, #tpu.memory_space<vmem>>, %arg4: memref<8x1xf32, #tpu.memory_space<vmem>>) attributes {dimension_semantics = [#tpu.dimension_semantics<parallel>, #tpu.dimension_semantics<arbitrary>], iteration_bounds = array<i64: 1, 1>, scalar_prefetch = 0 : i64, scratch_operands = 1 : i64, tpu.core_type = #tpu.core_type<tc>, window_params = [{transform_indices = @transform_0, window_bounds = array<i64: 8, 256>}, {transform_indices = @transform_1, window_bounds = array<i64: 8, 1>}]} {
    %c0_i32 = arith.constant 0 : i32
    %0 = arith.cmpi eq, %arg1, %c0_i32 : i32
    %1 = arith.extui %0 : i1 to i32
    %c0_i32_0 = arith.constant 0 : i32
    %2 = arith.cmpi ne, %1, %c0_i32_0 : i32
    scf.if %2 {
      %cst_8 = arith.constant 0.000000e+00 : f32
      %12 = vector.broadcast %cst_8 : f32 to vector<8x1xf32>
      %c0_9 = arith.constant 0 : index
      %c0_10 = arith.constant 0 : index
      %13 = vector.load %arg4[%c0_9, %c0_10] : memref<8x1xf32, #tpu.memory_space<vmem>>, vector<8x1xf32>
      tpu.vector_store %arg4[%c0_9, %c0_10], %12 {strides = array<i32>} : memref<8x1xf32, #tpu.memory_space<vmem>>, vector<8x1xf32>,
    } else {
    }
    %c0 = arith.constant 0 : index
    %c0_1 = arith.constant 0 : index
    %3 = vector.load %arg2[%c0, %c0_1] : memref<8x256xf32, #tpu.memory_space<vmem>>, vector<8x256xf32>
    %c0_2 = arith.constant 0 : index
    %c0_3 = arith.constant 0 : index
    %4 = vector.load %arg4[%c0_2, %c0_3] : memref<8x1xf32, #tpu.memory_space<vmem>>, vector<8x1xf32>
    %cst = arith.constant dense<0.000000e+00> : vector<8xf32>
    %5 = vector.multi_reduction <add>, %3, %cst [1] : vector<8x256xf32> to vector<8xf32>
    %6 = vector.shape_cast %5 : vector<8xf32> to vector<8x1xf32>
    %7 = arith.addf %4, %6 : vector<8x1xf32>
    %c0_4 = arith.constant 0 : index
    %c0_5 = arith.constant 0 : index
    %8 = vector.load %arg4[%c0_4, %c0_5] : memref<8x1xf32, #tpu.memory_space<vmem>>, vector<8x1xf32>
    tpu.vector_store %arg4[%c0_4, %c0_5], %7 {strides = array<i32>} : memref<8x1xf32, #tpu.memory_space<vmem>>, vector<8x1xf32>,
    %c0_i32_6 = arith.constant 0 : i32
    %9 = arith.cmpi eq, %arg1, %c0_i32_6 : i32
    %10 = arith.extui %9 : i1 to i32
    %c0_i32_7 = arith.constant 0 : i32
    %11 = arith.cmpi ne, %10, %c0_i32_7 : i32
    scf.if %11 {
      %c0_8 = arith.constant 0 : index
      %c0_9 = arith.constant 0 : index
      %12 = vector.load %arg4[%c0_8, %c0_9] : memref<8x1xf32, #tpu.memory_space<vmem>>, vector<8x1xf32>
      %cst_10 = arith.constant 3.906250e-03 : f32
      %13 = vector.broadcast %cst_10 : f32 to vector<8x1xf32>
      %14 = arith.mulf %12, %13 : vector<8x1xf32>
      %c0_11 = arith.constant 0 : index
      %c0_12 = arith.constant 0 : index
      %15 = vector.load %arg3[%c0_11, %c0_12] : memref<8x1xf32, #tpu.memory_space<vmem>>, vector<8x1xf32>
      tpu.vector_store %arg3[%c0_11, %c0_12], %14 {strides = array<i32>} : memref<8x1xf32, #tpu.memory_space<vmem>>, vector<8x1xf32>,
    } else {
    }
    return
  }
  func.func @transform_0(%arg0: i32, %arg1: i32) -> (i32, i32) {
    %c0_i32 = arith.constant 0 : i32
    return %arg0, %arg1 : i32, i32
  }
  func.func @transform_1(%arg0: i32, %arg1: i32) -> (i32, i32) {
    %c0_i32 = arith.constant 0 : i32
    %c0_i32_0 = arith.constant 0 : i32
    return %arg0, %c0_i32 : i32, i32
  }
}

</mosaic_0001>

<bundles_post_ra>
// kernel: tpu_custom_call.1
= control target key start
LH: loop header
LB: loop body
LE: loop exit
PB: predicated region body
PF: predicated region fallthrough
CT: control target
= control target key end

     0   :  { %6 = vsyncpa [#allocation4], 0  ;;  %s76_s9 = smov [#allocation3]   ;;  %s94_s0 = inlined_call_operand.hbm [shape: f32[8,256], index: 0, kind: input, shape index: {}]   ;;  %s95_s1 = inlined_call_operand.vmem [shape: f32[8,1], index: 1, kind: output, shape index: {}]  }
   0x1   :  { %s12_s8 = sshll.u32 %s94_s0, 4  ;;  %s14_s10 = sshll.u32 %s76_s9, 4  ;;  %s13_s8 = int_to_ptr.hbm [resolvable:$true] %s12_s8  ;;  %s15_s10 = int_to_ptr.vmem [resolvable:$true] %s14_s10 }
   0x2   :  { %17 = dma.hbm_to_vmem [thread:$0]  %s13_s8, 256, %s15_s10, [#allocation4]  }
   0x3   :  { %74 = dma.done.wait [#allocation4], 256  }
   0x4   :  { %75 = vsyncadd [#allocation4], 4294967040  ;;  %vm26_vm0 = vcmask 7168   ;;  %v77_v0 = vmov 0.0   ;;  %v28_v1 = vld [vmem:[#allocation3] sm:$0xff]  ;;  %v29_v2 = vld [vmem:[#allocation3 + $0x8] sm:$0xff] }
   0x5   :  { %27 = vst.msk [vmem:[#allocation2] sm:$0xff] %vm26_vm0, %v77_v0  ;;  %v31_v3 = vadd.f32 %v29_v2, %v28_v1 }
   0x7   :  { %32 = vadd.xlane.f32.xlu0 %v31_v3 }
   0xc   :  { %v30_v4 = vld [vmem:[#allocation2] sm:$0xff] }
  0x7a   :  { %v33_v5 = vpop.xlane.xlu0 %32 }
  0x7b   :  { %v34_v6 = vadd.f32 %v33_v5, %v30_v4 }
  0x7d   :  { %36 = vst.msk [vmem:[#allocation2] sm:$0xff] %vm26_vm0, %v34_v6 }
  0x84   :  { %v40_v7 = vld [vmem:[#allocation2] sm:$0xff] }
  0x85   :  { %v41_v8 = vmul.f32 0.00390625, %v40_v7 }
  0x87   :  { %42 = vst.msk [vmem:[%s95_s1] sm:$0xff] %vm26_vm0, %v41_v8 }
  0x88   :  { %47 = vsyncpa [#allocation4], 1 }

</bundles_post_ra>
